<compile_context>
chip_gen: v5e
topology: v5e:2x2
jax: 0.10.0
libtpu: 0.0.40
codegen_flags: <defaults>
</compile_context>

<pallas_src>
import jax
import jax.numpy as jnp
from jax.experimental import pallas as pl
from jax.experimental.pallas import tpu as pltpu


def highway_kernel(x_ref, w_ref, o_ref):
    """x_ref: (TM, D); w_ref: (L, D, 2D) (pre-transposed nn.Linear weights); o_ref: (TM, D)."""
    num_layers, d, _ = w_ref.shape
    mm_dtype = w_ref.dtype  # bf16 weights -> bf16 MXU operands; accumulation stays f32
    cur = x_ref[...].astype(jnp.float32)
    # Static unroll over layers: num_layers is a small compile-time constant.
    for l in range(num_layers):
        # Single fused MXU pass per layer: (TM, D) @ (D, 2D) -> (TM, 2D), f32 accumulate.
        proj = jnp.dot(
            cur.astype(mm_dtype),
            w_ref[l],
            preferred_element_type=jnp.float32,
        )
        nonlinear = jnp.maximum(proj[:, :d], 0.0)  # relu  (cols 0:D)
        gate = jnp.tanh(proj[:, d:])               # tanh  (cols D:2D)
        # 3-op highway blend: gate*cur + (1-gate)*nl == nl + gate*(cur - nl).
        cur = nonlinear + gate * (cur - nonlinear)
    o_ref[...] = cur.astype(o_ref.dtype)


def highway_pallas(x, weights, *, matmul_dtype=None, tm_max=512):
    """x: (..., D) float32.  weights: (L, 2D, D) — PyTorch nn.Linear weight per layer.

    matmul_dtype: optional dtype (e.g. jnp.bfloat16) for the MXU operands only;
    accumulation and the gate/residual update remain in float32.
    """
    orig_shape = x.shape
    D = x.shape[-1]
    L, two_d, d2 = weights.shape
    assert two_d == 2 * D and d2 == D, "weights must be (L, 2*D, D)"

    if matmul_dtype is not None:
        weights = weights.astype(matmul_dtype)  # also halves weight HBM/VMEM traffic

    # One-time wrapper transpose to (L, D, 2D): the kernel then runs the canonical
    # MXU contraction without any per-grid-step in-kernel transposes.
    weights_t = jnp.swapaxes(weights, 1, 2)

    x2 = x.reshape(-1, D)
    M = x2.shape[0]

    # Row tile: full M when small; otherwise a large sublane-aligned tile, clamped so
    # double-buffered x/out tiles + the f32 working set fit the default scoped VMEM.
    row_bytes = max(1, D * 4 * 10)  # ~10 f32 rows of width D alive per input row (x/out dbuf, cur, proj, temps)
    tm_budget = max(8, ((16 << 20) // row_bytes) // 8 * 8)
    tm = M if M <= tm_max else max(8, min(tm_max, tm_budget))
    grid = (pl.cdiv(M, tm),)

    x_spec = pl.BlockSpec((tm, D), lambda i: (i, 0))
    o_spec = pl.BlockSpec((tm, D), lambda i: (i, 0))

    def run(single_buffer_weights: bool):
        if single_buffer_weights:
            # Weights are resident (constant block index) -> no need to
            # double-buffer them; frees VMEM headroom for a larger row tile.
            w_spec = pl.BlockSpec(
                (L, D, 2 * D), lambda i: (0, 0, 0), pipeline_mode=pl.Buffered(1)
            )
        else:
            w_spec = pl.BlockSpec((L, D, 2 * D), lambda i: (0, 0, 0))
        fn = pl.pallas_call(
            highway_kernel,
            out_shape=jax.ShapeDtypeStruct((M, D), x.dtype),
            grid=grid,
            in_specs=[x_spec, w_spec],
            out_specs=o_spec,
            compiler_params=pltpu.CompilerParams(
                dimension_semantics=("parallel",)
            ),
        )
        return jax.block_until_ready(fn(x2, weights_t))

    try:
        out = run(True)
    except Exception:
        # pl.Buffered(1) (single-buffered resident weights) not supported on this
        # jax version — fall back to the default double-buffered weight block.
        out = run(False)
    return out.reshape(orig_shape)


def highway_ref(x, weights):
    """Pure-JAX reference matching the PyTorch forward exactly."""
    cur = x
    for l in range(weights.shape[0]):
        W = weights[l]                      # (2D, D)
        proj = cur @ W.T                    # (..., 2D)
        nonlinear, gate = jnp.split(proj, 2, axis=-1)
        nonlinear = jax.nn.relu(nonlinear)
        gate = jnp.tanh(gate)
        cur = gate * cur + (1.0 - gate) * nonlinear
    return cur


if __name__ == "__main__":
    input_dim = 32
    num_layers = 2
    batch, seq = 2, 8

    key = jax.random.PRNGKey(0)
    kx, kw = jax.random.split(key)
    x = jax.random.normal(kx, (batch, seq, input_dim), dtype=jnp.float32)
    # Deterministic init mimicking nn.Linear's uniform(-1/sqrt(fan_in), 1/sqrt(fan_in)).
    bound = 1.0 / jnp.sqrt(jnp.float32(input_dim))
    weights = jax.random.uniform(
        kw, (num_layers, 2 * input_dim, input_dim),
        minval=-bound, maxval=bound, dtype=jnp.float32,
    )

    ref = highway_ref(x, weights)

    # Full-precision path (exact match to the PyTorch forward).
    out = jax.block_until_ready(highway_pallas(x, weights))
    assert out.shape == ref.shape and out.dtype == ref.dtype
    assert jnp.allclose(out, ref, atol=1e-4, rtol=1e-4), "f32 kernel mismatch vs reference"

    # bf16-MXU path (f32 accumulation + f32 highway update) — looser tolerance.
    out_bf16 = jax.block_until_ready(
        highway_pallas(x, weights, matmul_dtype=jnp.bfloat16)
    )
    assert jnp.allclose(out_bf16, ref, atol=5e-2, rtol=5e-2), "bf16 kernel mismatch vs reference"

    print("KERNEL_OK")
</pallas_src>

<mosaic_0001>
module attributes {stable_mosaic.version = 11 : i64} {
  func.func @highway_kernel(%arg0: i32, %arg1: memref<16x32xf32, #tpu.memory_space<vmem>>, %arg2: memref<2x32x64xf32, #tpu.memory_space<vmem>>, %arg3: memref<16x32xf32, #tpu.memory_space<vmem>>) attributes {dimension_semantics = [#tpu.dimension_semantics<parallel>], iteration_bounds = array<i64: 1>, scalar_prefetch = 0 : i64, scratch_operands = 0 : i64, tpu.core_type = #tpu.core_type<tc>, window_params = [{transform_indices = @transform_0, window_bounds = array<i64: 16, 32>}, {pipeline_mode = #tpu.pipeline_mode<synchronous>, transform_indices = @transform_1, window_bounds = array<i64: 2, 32, 64>}, {transform_indices = @transform_2, window_bounds = array<i64: 16, 32>}]} {
    %c0 = arith.constant 0 : index
    %c0_0 = arith.constant 0 : index
    %0 = vector.load %arg1[%c0, %c0_0] : memref<16x32xf32, #tpu.memory_space<vmem>>, vector<16x32xf32>
    %c0_1 = arith.constant 0 : index
    %c0_2 = arith.constant 0 : index
    %c0_3 = arith.constant 0 : index
    %1 = vector.load %arg2[%c0_1, %c0_2, %c0_3] : memref<2x32x64xf32, #tpu.memory_space<vmem>>, vector<1x32x64xf32>
    %2 = vector.shape_cast %1 : vector<1x32x64xf32> to vector<32x64xf32>
    %cst = arith.constant dense<0.000000e+00> : vector<16x64xf32>
    %3 = tpu.matmul %0, %2, %cst {dimension_numbers = #tpu.dot_dimension_numbers<[1], [0], [0], [1], [0, 0, 1, 1], [], []>} : vector<16x32xf32>, vector<32x64xf32>, vector<16x64xf32> -> vector<16x64xf32>
    %4 = vector.extract_strided_slice %3 {offsets = [0, 0], sizes = [16, 32], strides = [1, 1]} : vector<16x64xf32> to vector<16x32xf32>
    %cst_4 = arith.constant 0.000000e+00 : f32
    %5 = vector.broadcast %cst_4 : f32 to vector<16x32xf32>
    %6 = arith.maximumf %4, %5 : vector<16x32xf32>
    %7 = vector.extract_strided_slice %3 {offsets = [0, 32], sizes = [16, 32], strides = [1, 1]} : vector<16x64xf32> to vector<16x32xf32>
    %8 = math.tanh %7 : vector<16x32xf32>
    %9 = arith.subf %0, %6 : vector<16x32xf32>
    %10 = arith.mulf %8, %9 : vector<16x32xf32>
    %11 = arith.addf %6, %10 : vector<16x32xf32>
    %c1 = arith.constant 1 : index
    %c0_5 = arith.constant 0 : index
    %c0_6 = arith.constant 0 : index
    %12 = vector.load %arg2[%c1, %c0_5, %c0_6] : memref<2x32x64xf32, #tpu.memory_space<vmem>>, vector<1x32x64xf32>
    %13 = vector.shape_cast %12 : vector<1x32x64xf32> to vector<32x64xf32>
    %cst_7 = arith.constant dense<0.000000e+00> : vector<16x64xf32>
    %14 = tpu.matmul %11, %13, %cst_7 {dimension_numbers = #tpu.dot_dimension_numbers<[1], [0], [0], [1], [0, 0, 1, 1], [], []>} : vector<16x32xf32>, vector<32x64xf32>, vector<16x64xf32> -> vector<16x64xf32>
    %15 = vector.extract_strided_slice %14 {offsets = [0, 0], sizes = [16, 32], strides = [1, 1]} : vector<16x64xf32> to vector<16x32xf32>
    %cst_8 = arith.constant 0.000000e+00 : f32
    %16 = vector.broadcast %cst_8 : f32 to vector<16x32xf32>
    %17 = arith.maximumf %15, %16 : vector<16x32xf32>
    %18 = vector.extract_strided_slice %14 {offsets = [0, 32], sizes = [16, 32], strides = [1, 1]} : vector<16x64xf32> to vector<16x32xf32>
    %19 = math.tanh %18 : vector<16x32xf32>
    %20 = arith.subf %11, %17 : vector<16x32xf32>
    %21 = arith.mulf %19, %20 : vector<16x32xf32>
    %22 = arith.addf %17, %21 : vector<16x32xf32>
    %c0_9 = arith.constant 0 : index
    %c0_10 = arith.constant 0 : index
    %23 = vector.load %arg3[%c0_9, %c0_10] : memref<16x32xf32, #tpu.memory_space<vmem>>, vector<16x32xf32>
    tpu.vector_store %arg3[%c0_9, %c0_10], %22 {strides = array<i32>} : memref<16x32xf32, #tpu.memory_space<vmem>>, vector<16x32xf32>,
    return
  }
  func.func @transform_0(%arg0: i32) -> (i32, i32) {
    %c0_i32 = arith.constant 0 : i32
    %c0_i32_0 = arith.constant 0 : i32
    return %arg0, %c0_i32 : i32, i32
  }
  func.func @transform_1(%arg0: i32) -> (i32, i32, i32) {
    %c0_i32 = arith.constant 0 : i32
    %c0_i32_0 = arith.constant 0 : i32
    %c0_i32_1 = arith.constant 0 : i32
    %c0_i32_2 = arith.constant 0 : i32
    return %c0_i32, %c0_i32_0, %c0_i32_1 : i32, i32, i32
  }
  func.func @transform_2(%arg0: i32) -> (i32, i32) {
    %c0_i32 = arith.constant 0 : i32
    %c0_i32_0 = arith.constant 0 : i32
    return %arg0, %c0_i32 : i32, i32
  }
}

module attributes {stable_mosaic.version = 11 : i64} {
  func.func @highway_kernel(%arg0: i32, %arg1: memref<16x32xf32, #tpu.memory_space<vmem>>, %arg2: memref<2x32x64xf32, #tpu.memory_space<vmem>>, %arg3: memref<16x32xf32, #tpu.memory_space<vmem>>) attributes {dimension_semantics = [#tpu.dimension_semantics<parallel>], iteration_bounds = array<i64: 1>, scalar_prefetch = 0 : i64, scratch_operands = 0 : i64, tpu.core_type = #tpu.core_type<tc>, window_params = [{transform_indices = @transform_0, window_bounds = array<i64: 16, 32>}, {pipeline_mode = #tpu.pipeline_mode<synchronous>, transform_indices = @transform_1, window_bounds = array<i64: 2, 32, 64>}, {transform_indices = @transform_2, window_bounds = array<i64: 16, 32>}]} {
    %c0 = arith.constant 0 : index
    %c0_0 = arith.constant 0 : index
    %0 = vector.load %arg1[%c0, %c0_0] : memref<16x32xf32, #tpu.memory_space<vmem>>, vector<16x32xf32>
    %c0_1 = arith.constant 0 : index
    %c0_2 = arith.constant 0 : index
    %c0_3 = arith.constant 0 : index
    %1 = vector.load %arg2[%c0_1, %c0_2, %c0_3] : memref<2x32x64xf32, #tpu.memory_space<vmem>>, vector<1x32x64xf32>
    %2 = vector.shape_cast %1 : vector<1x32x64xf32> to vector<32x64xf32>
    %cst = arith.constant dense<0.000000e+00> : vector<16x64xf32>
    %3 = tpu.matmul %0, %2, %cst {dimension_numbers = #tpu.dot_dimension_numbers<[1], [0], [0], [1], [0, 0, 1, 1], [], []>} : vector<16x32xf32>, vector<32x64xf32>, vector<16x64xf32> -> vector<16x64xf32>
    %4 = vector.extract_strided_slice %3 {offsets = [0, 0], sizes = [16, 32], strides = [1, 1]} : vector<16x64xf32> to vector<16x32xf32>
    %cst_4 = arith.constant 0.000000e+00 : f32
    %5 = vector.broadcast %cst_4 : f32 to vector<16x32xf32>
    %6 = arith.maximumf %4, %5 : vector<16x32xf32>
    %7 = vector.extract_strided_slice %3 {offsets = [0, 32], sizes = [16, 32], strides = [1, 1]} : vector<16x64xf32> to vector<16x32xf32>
    %8 = math.tanh %7 : vector<16x32xf32>
    %9 = arith.subf %0, %6 : vector<16x32xf32>
    %10 = arith.mulf %8, %9 : vector<16x32xf32>
    %11 = arith.addf %6, %10 : vector<16x32xf32>
    %c1 = arith.constant 1 : index
    %c0_5 = arith.constant 0 : index
    %c0_6 = arith.constant 0 : index
    %12 = vector.load %arg2[%c1, %c0_5, %c0_6] : memref<2x32x64xf32, #tpu.memory_space<vmem>>, vector<1x32x64xf32>
    %13 = vector.shape_cast %12 : vector<1x32x64xf32> to vector<32x64xf32>
    %cst_7 = arith.constant dense<0.000000e+00> : vector<16x64xf32>
    %14 = tpu.matmul %11, %13, %cst_7 {dimension_numbers = #tpu.dot_dimension_numbers<[1], [0], [0], [1], [0, 0, 1, 1], [], []>} : vector<16x32xf32>, vector<32x64xf32>, vector<16x64xf32> -> vector<16x64xf32>
    %15 = vector.extract_strided_slice %14 {offsets = [0, 0], sizes = [16, 32], strides = [1, 1]} : vector<16x64xf32> to vector<16x32xf32>
    %cst_8 = arith.constant 0.000000e+00 : f32
    %16 = vector.broadcast %cst_8 : f32 to vector<16x32xf32>
    %17 = arith.maximumf %15, %16 : vector<16x32xf32>
    %18 = vector.extract_strided_slice %14 {offsets = [0, 32], sizes = [16, 32], strides = [1, 1]} : vector<16x64xf32> to vector<16x32xf32>
    %19 = math.tanh %18 : vector<16x32xf32>
    %20 = arith.subf %11, %17 : vector<16x32xf32>
    %21 = arith.mulf %19, %20 : vector<16x32xf32>
    %22 = arith.addf %17, %21 : vector<16x32xf32>
    %c0_9 = arith.constant 0 : index
    %c0_10 = arith.constant 0 : index
    %23 = vector.load %arg3[%c0_9, %c0_10] : memref<16x32xf32, #tpu.memory_space<vmem>>, vector<16x32xf32>
    tpu.vector_store %arg3[%c0_9, %c0_10], %22 {strides = array<i32>} : memref<16x32xf32, #tpu.memory_space<vmem>>, vector<16x32xf32>,
    return
  }
  func.func @transform_0(%arg0: i32) -> (i32, i32) {
    %c0_i32 = arith.constant 0 : i32
    %c0_i32_0 = arith.constant 0 : i32
    return %arg0, %c0_i32 : i32, i32
  }
  func.func @transform_1(%arg0: i32) -> (i32, i32, i32) {
    %c0_i32 = arith.constant 0 : i32
    %c0_i32_0 = arith.constant 0 : i32
    %c0_i32_1 = arith.constant 0 : i32
    %c0_i32_2 = arith.constant 0 : i32
    return %c0_i32, %c0_i32_0, %c0_i32_1 : i32, i32, i32
  }
  func.func @transform_2(%arg0: i32) -> (i32, i32) {
    %c0_i32 = arith.constant 0 : i32
    %c0_i32_0 = arith.constant 0 : i32
    return %arg0, %c0_i32 : i32, i32
  }
}

</mosaic_0001>

<bundles_post_ra>
// kernel: tpu_custom_call.1
= control target key start
LH: loop header
LB: loop body
LE: loop exit
PB: predicated region body
PF: predicated region fallthrough
CT: control target
= control target key end

     0   :  { %7 = vsyncpa [#allocation3], 0  ;;  %s347_s0 = inlined_call_operand.hbm [shape: f32[16,32], index: 0, kind: input, shape index: {}]   ;;  %s348_s1 = inlined_call_operand.hbm [shape: f32[2,32,64], index: 1, kind: input, shape index: {}]   ;;  %s349_s2 = inlined_call_operand.hbm [shape: f32[16,32], index: 2, kind: output, shape index: {}]  }
   0x1   :  { %8 = vsyncpa [#allocation6], 0 }
   0x2   :  { %9 = vsyncpa [#allocation4], 0  ;;  %s14_s11 = sshll.u32 %s347_s0, 4  ;;  %s293_s12 = smov [#allocation2]   ;;  %s15_s11 = int_to_ptr.hbm [resolvable:$true] %s14_s11 }
   0x3   :  { %s16_s13 = sshll.u32 %s293_s12, 4  ;;  %s27_s16 = sshll.u32 %s348_s1, 4  ;;  %s17_s13 = int_to_ptr.vmem [resolvable:$true] %s16_s13  ;;  %s28_s16 = int_to_ptr.hbm [resolvable:$true] %s27_s16 }
   0x4   :  { %s294_s17 = smov 128   ;;  %s295_s18 = smov 8  }
   0x5   :  { %22 = dma.hbm_to_vmem [thread:$0]  %s15_s11, 256, %s17_s13, [#allocation3], %s294_s17, %s294_s17, %s295_s18  }
   0x6   :  { %s296_s19 = smov [#allocation5]  }
   0x7   :  { %s29_s20 = sshll.u32 %s296_s19, 4  ;;  %s30_s20 = int_to_ptr.vmem [resolvable:$true] %s29_s20 }
   0x8   :  { %35 = dma.hbm_to_vmem [thread:$0]  %s28_s16, 1024, %s30_s20, [#allocation6], %s294_s17, %s294_s17, %s295_s18  }
   0x9   :  { %287 = dma.done.wait [#allocation3], 256  }
   0xa   :  { %288 = vsyncadd [#allocation3], 4294967040 }
   0xb   :  { %289 = dma.done.wait [#allocation6], 1024  }
   0xc   :  { %290 = vsyncadd [#allocation6], 4294966272  ;;  %v49_v0 = vld [vmem:[#allocation5 + $0x18] sm:$0xff]  ;;  %v48_v1 = vld [vmem:[#allocation5 + $0x10] sm:$0xff]  ;;  %vm50_vm0 = vcmask 261120   ;;  %s297_s0 = smov 32  }
   0xd   :  { %192 = vmatpush.msra.mxu2 %v49_v0  ;;  %69 = vmatpush.msra.mxu0 %v49_v0  ;;  %v47_v2 = vld [vmem:[#allocation5 + $0x8] sm:$0xff]  ;;  %v46_v3 = vld [vmem:[#allocation5] sm:$0xff]  ;;  %v45_v4 = vld [vmem:[#allocation2 + $0x8] sm:$0xff]  ;;  %s298_s1 = smov 96   ;;  %s299_s21 = smov [#allocation7]  }
   0xe   :  { %v44_v5 = vld [vmem:[#allocation2] sm:$0xff]  ;;  %v110_v12 = vld [vmem:[#allocation5 + $0x38] sm:$0xff]  ;;  %v108_v14 = vld [vmem:[#allocation5 + $0x28] sm:$0xff]  ;;  %s172_s22 = sshll.u32 %s299_s21, 4  ;;  %s174_s25 = sshll.u32 %s349_s2, 4  ;;  %s173_s22 = int_to_ptr.vmem [resolvable:$true] %s172_s22  ;;  %s175_s25 = int_to_ptr.hbm [resolvable:$true] %s174_s25 }
   0xf   :  { %193 = vmatpush.msra.mxu2 %v48_v1  ;;  %70 = vmatpush.msra.mxu0 %v48_v1  ;;  %v109_v13 = vld [vmem:[#allocation5 + $0x30] sm:$0xff]  ;;  %v107_v21 = vld [vmem:[#allocation5 + $0x20] sm:$0xff] }
  0x10   :  { %196 = vmatpush.msra.mxu3 %v110_v12  ;;  %129 = vmatpush.msra.mxu1 %v110_v12 }
  0x11   :  { %194 = vmatpush.msra.mxu2 %v47_v2  ;;  %71 = vmatpush.msra.mxu0 %v47_v2 }
  0x12   :  { %197 = vmatpush.msra.mxu3 %v109_v13  ;;  %130 = vmatpush.msra.mxu1 %v109_v13 }
  0x13   :  { %195 = vmatpush.msra.mxu2 %v46_v3  ;;  %72 = vmatpush.msra.mxu0 %v46_v3 }
  0x14   :  { %189 = vmatmul.msk.f32.vlgmr.msra.gmra.mxu2 %vm50_vm0, %v45_v4  ;;  %188 = vmatmul.msk.f32.vlgmr.msra.gmra.mxu0 %vm50_vm0, %v44_v5 }
  0x15   :  { %198 = vmatpush.msra.mxu3 %v108_v14  ;;  %131 = vmatpush.msra.mxu1 %v108_v14 }
  0x17   :  { %199 = vmatpush.msra.mxu3 %v107_v21  ;;  %132 = vmatpush.msra.mxu1 %v107_v21 }
  0x91   :  { %v74_v8 = vpop.f32.mrf.mxu0 }
  0x92   :  { %v80_v10 = vmax.f32 %v74_v8, 0.0 }
  0x94   :  { %v84_v11 = vsub.f32 %v44_v5, %v80_v10 }
  0x97   :  { %v77_v6 = vpop.f32.mrf.mxu2 }
  0x98   :  { %v81_v7 = vmax.f32 %v77_v6, 0.0  ;;  %207 = vtanh.f32 %v77_v6 }
  0x99   :  { %209 = vtanh.f32 %v74_v8 }
  0x9a   :  { %v85_v9 = vsub.f32 %v45_v4, %v81_v7 }
  0x9c   :  { %90 = vrot.lane.b32.xlu0 %v85_v9, %s297_s0 }
  0x9e   :  { %v208_v15 = vpop.eup %207 }
  0x9f   :  { %v210_v18 = vpop.eup %209 }
  0xa4   :  { %88 = vrot.lane.b32.xlu0 %v84_v11, %s297_s0 }
 0x10e   :  { %v91_v16 = vpop.permute.xlu0 %90 }
 0x10f   :  { %v95_v17 = vmul.f32 %v208_v15, %v91_v16 }
 0x111   :  { %100 = vrot.lane.b32.xlu1 %v95_v17, %s298_s1 }
 0x116   :  { %v89_v19 = vpop.permute.xlu0 %88 }
 0x117   :  { %v94_v20 = vmul.f32 %v210_v18, %v89_v19 }
 0x119   :  { %98 = vrot.lane.b32.xlu1 %v94_v20, %s298_s1 }
 0x183   :  { %v101_v22 = vpop.permute.xlu1 %100 }
 0x184   :  { %v105_v23 = vadd.f32 %v101_v22, %v81_v7 }
 0x186   :  { %191 = vmatmul.msk.f32.vlgmr.msra.gmra.mxu3 %vm50_vm0, %v105_v23 }
 0x18b   :  { %v99_v24 = vpop.permute.xlu1 %98 }
 0x18c   :  { %v104_v25 = vadd.f32 %v99_v24, %v80_v10 }
 0x18e   :  { %190 = vmatmul.msk.f32.vlgmr.msra.gmra.mxu1 %vm50_vm0, %v104_v25 }
 0x209   :  { %v137_v29 = vpop.f32.mrf.mxu3 }
 0x20a   :  { %v141_v30 = vmax.f32 %v137_v29, 0.0 }
 0x20b   :  { %v134_v26 = vpop.f32.mrf.mxu1 }
 0x20c   :  { %v140_v27 = vmax.f32 %v134_v26, 0.0  ;;  %v145_v31 = vsub.f32 %v105_v23, %v141_v30  ;;  %211 = vtanh.f32 %v134_v26 }
 0x20d   :  { %213 = vtanh.f32 %v137_v29 }
 0x20e   :  { %v144_v28 = vsub.f32 %v104_v25, %v140_v27 }
 0x210   :  { %148 = vrot.lane.b32.xlu2 %v144_v28, %s297_s0 }
 0x212   :  { %v212_v32 = vpop.eup %211 }
 0x213   :  { %v214_v35 = vpop.eup %213 }
 0x218   :  { %150 = vrot.lane.b32.xlu2 %v145_v31, %s297_s0 }
 0x26a   :  { %v149_v33 = vpop.permute.xlu2 %148 }
 0x26b   :  { %v154_v34 = vmul.f32 %v212_v32, %v149_v33 }
 0x26d   :  { %158 = vrot.lane.b32.xlu0 %v154_v34, %s298_s1 }
 0x272   :  { %v151_v36 = vpop.permute.xlu2 %150 }
 0x273   :  { %v155_v37 = vmul.f32 %v214_v35, %v151_v36 }
 0x275   :  { %160 = vrot.lane.b32.xlu1 %v155_v37, %s298_s1 }
 0x2df   :  { %v159_v38 = vpop.permute.xlu0 %158 }
 0x2e0   :  { %v164_v39 = vadd.f32 %v159_v38, %v140_v27 }
 0x2e2   :  { %166 = vst.msk [vmem:[#allocation7] sm:$0xff] %vm50_vm0, %v164_v39 }
 0x2e7   :  { %v161_v40 = vpop.permute.xlu1 %160 }
 0x2e8   :  { %v165_v41 = vadd.f32 %v161_v40, %v141_v30 }
 0x2ea   :  { %167 = vst.msk [vmem:[#allocation7 + $0x8] sm:$0xff] %vm50_vm0, %v165_v41 }
 0x2eb   :  { %180 = dma.vmem_to_hbm [thread:$0]  %s173_s22, 256, %s175_s25, [#allocation4], %s294_s17, %s294_s17, %s295_s18  }
 0x2ec   :  { %291 = dma.done.wait [#allocation4], 256  }
 0x2ed   :  { %292 = vsyncadd [#allocation4], 4294967040 }
 0x2ee   :  { %185 = vsyncpa [#allocation3], 1 }
 0x2ef   :  { %186 = vsyncpa [#allocation6], 1 }
 0x2f0   :  { %187 = vsyncpa [#allocation4], 1 }

// kernel: tpu_custom_call.1
= control target key start
LH: loop header
LB: loop body
LE: loop exit
PB: predicated region body
PF: predicated region fallthrough
CT: control target
= control target key end

     0   :  { %7 = vsyncpa [#allocation3], 0  ;;  %s347_s0 = inlined_call_operand.hbm [shape: f32[16,32], index: 0, kind: input, shape index: {}]   ;;  %s348_s1 = inlined_call_operand.hbm [shape: f32[2,32,64], index: 1, kind: input, shape index: {}]   ;;  %s349_s2 = inlined_call_operand.hbm [shape: f32[16,32], index: 2, kind: output, shape index: {}]  }
   0x1   :  { %8 = vsyncpa [#allocation6], 0 }
   0x2   :  { %9 = vsyncpa [#allocation4], 0  ;;  %s14_s11 = sshll.u32 %s347_s0, 4  ;;  %s293_s12 = smov [#allocation2]   ;;  %s15_s11 = int_to_ptr.hbm [resolvable:$true] %s14_s11 }
   0x3   :  { %s16_s13 = sshll.u32 %s293_s12, 4  ;;  %s27_s16 = sshll.u32 %s348_s1, 4  ;;  %s17_s13 = int_to_ptr.vmem [resolvable:$true] %s16_s13  ;;  %s28_s16 = int_to_ptr.hbm [resolvable:$true] %s27_s16 }
   0x4   :  { %s294_s17 = smov 128   ;;  %s295_s18 = smov 8  }
   0x5   :  { %22 = dma.hbm_to_vmem [thread:$0]  %s15_s11, 256, %s17_s13, [#allocation3], %s294_s17, %s294_s17, %s295_s18  }
   0x6   :  { %s296_s19 = smov [#allocation5]  }
   0x7   :  { %s29_s20 = sshll.u32 %s296_s19, 4  ;;  %s30_s20 = int_to_ptr.vmem [resolvable:$true] %s29_s20 }
   0x8   :  { %35 = dma.hbm_to_vmem [thread:$0]  %s28_s16, 1024, %s30_s20, [#allocation6], %s294_s17, %s294_s17, %s295_s18  }
   0x9   :  { %287 = dma.done.wait [#allocation3], 256  }
   0xa   :  { %288 = vsyncadd [#allocation3], 4294967040 }
   0xb   :  { %289 = dma.done.wait [#allocation6], 1024  }
   0xc   :  { %290 = vsyncadd [#allocation6], 4294966272  ;;  %v49_v0 = vld [vmem:[#allocation5 + $0x18] sm:$0xff]  ;;  %v48_v1 = vld [vmem:[#allocation5 + $0x10] sm:$0xff]  ;;  %vm50_vm0 = vcmask 261120   ;;  %s297_s0 = smov 32  }
   0xd   :  { %192 = vmatpush.msra.mxu2 %v49_v0  ;;  %69 = vmatpush.msra.mxu0 %v49_v0  ;;  %v47_v2 = vld [vmem:[#allocation5 + $0x8] sm:$0xff]  ;;  %v46_v3 = vld [vmem:[#allocation5] sm:$0xff]  ;;  %v45_v4 = vld [vmem:[#allocation2 + $0x8] sm:$0xff]  ;;  %s298_s1 = smov 96   ;;  %s299_s21 = smov [#allocation7]  }
   0xe   :  { %v44_v5 = vld [vmem:[#allocation2] sm:$0xff]  ;;  %v110_v12 = vld [vmem:[#allocation5 + $0x38] sm:$0xff]  ;;  %v108_v14 = vld [vmem:[#allocation5 + $0x28] sm:$0xff]  ;;  %s172_s22 = sshll.u32 %s299_s21, 4  ;;  %s174_s25 = sshll.u32 %s349_s2, 4  ;;  %s173_s22 = int_to_ptr.vmem [resolvable:$true] %s172_s22  ;;  %s175_s25 = int_to_ptr.hbm [resolvable:$true] %s174_s25 }
   0xf   :  { %193 = vmatpush.msra.mxu2 %v48_v1  ;;  %70 = vmatpush.msra.mxu0 %v48_v1  ;;  %v109_v13 = vld [vmem:[#allocation5 + $0x30] sm:$0xff]  ;;  %v107_v21 = vld [vmem:[#allocation5 + $0x20] sm:$0xff] }
  0x10   :  { %196 = vmatpush.msra.mxu3 %v110_v12  ;;  %129 = vmatpush.msra.mxu1 %v110_v12 }
  0x11   :  { %194 = vmatpush.msra.mxu2 %v47_v2  ;;  %71 = vmatpush.msra.mxu0 %v47_v2 }
  0x12   :  { %197 = vmatpush.msra.mxu3 %v109_v13  ;;  %130 = vmatpush.msra.mxu1 %v109_v13 }
  0x13   :  { %195 = vmatpush.msra.mxu2 %v46_v3  ;;  %72 = vmatpush.msra.mxu0 %v46_v3 }
  0x14   :  { %189 = vmatmul.msk.f32.vlgmr.msra.gmra.mxu2 %vm50_vm0, %v45_v4  ;;  %188 = vmatmul.msk.f32.vlgmr.msra.gmra.mxu0 %vm50_vm0, %v44_v5 }
  0x15   :  { %198 = vmatpush.msra.mxu3 %v108_v14  ;;  %131 = vmatpush.msra.mxu1 %v108_v14 }
  0x17   :  { %199 = vmatpush.msra.mxu3 %v107_v21  ;;  %132 = vmatpush.msra.mxu1 %v107_v21 }
  0x91   :  { %v74_v8 = vpop.f32.mrf.mxu0 }
  0x92   :  { %v80_v10 = vmax.f32 %v74_v8, 0.0 }
  0x94   :  { %v84_v11 = vsub.f32 %v44_v5, %v80_v10 }
  0x97   :  { %v77_v6 = vpop.f32.mrf.mxu2 }
  0x98   :  { %v81_v7 = vmax.f32 %v77_v6, 0.0  ;;  %207 = vtanh.f32 %v77_v6 }
  0x99   :  { %209 = vtanh.f32 %v74_v8 }
  0x9a   :  { %v85_v9 = vsub.f32 %v45_v4, %v81_v7 }
  0x9c   :  { %90 = vrot.lane.b32.xlu0 %v85_v9, %s297_s0 }
  0x9e   :  { %v208_v15 = vpop.eup %207 }
  0x9f   :  { %v210_v18 = vpop.eup %209 }
  0xa4   :  { %88 = vrot.lane.b32.xlu0 %v84_v11, %s297_s0 }
 0x10e   :  { %v91_v16 = vpop.permute.xlu0 %90 }
 0x10f   :  { %v95_v17 = vmul.f32 %v208_v15, %v91_v16 }
 0x111   :  { %100 = vrot.lane.b32.xlu1 %v95_v17, %s298_s1 }
 0x116   :  { %v89_v19 = vpop.permute.xlu0 %88 }
 0x117   :  { %v94_v20 = vmul.f32 %v210_v18, %v89_v19 }
 0x119   :  { %98 = vrot.lane.b32.xlu1 %v94_v20, %s298_s1 }
 0x183   :  { %v101_v22 = vpop.permute.xlu1 %100 }
 0x184   :  { %v105_v23 = vadd.f32 %v101_v22, %v81_v7 }
 0x186   :  { %191 = vmatmul.msk.f32.vlgmr.msra.gmra.mxu3 %vm50_vm0, %v105_v23 }
 0x18b   :  { %v99_v24 = vpop.permute.xlu1 %98 }
 0x18c   :  { %v104_v25 = vadd.f32 %v99_v24, %v80_v10 }
 0x18e   :  { %190 = vmatmul.msk.f32.vlgmr.msra.gmra.mxu1 %vm50_vm0, %v104_v25 }
 0x209   :  { %v137_v29 = vpop.f32.mrf.mxu3 }
 0x20a   :  { %v141_v30 = vmax.f32 %v137_v29, 0.0 }
 0x20b   :  { %v134_v26 = vpop.f32.mrf.mxu1 }
 0x20c   :  { %v140_v27 = vmax.f32 %v134_v26, 0.0  ;;  %v145_v31 = vsub.f32 %v105_v23, %v141_v30  ;;  %211 = vtanh.f32 %v134_v26 }
 0x20d   :  { %213 = vtanh.f32 %v137_v29 }
 0x20e   :  { %v144_v28 = vsub.f32 %v104_v25, %v140_v27 }
 0x210   :  { %148 = vrot.lane.b32.xlu2 %v144_v28, %s297_s0 }
 0x212   :  { %v212_v32 = vpop.eup %211 }
 0x213   :  { %v214_v35 = vpop.eup %213 }
 0x218   :  { %150 = vrot.lane.b32.xlu2 %v145_v31, %s297_s0 }
 0x26a   :  { %v149_v33 = vpop.permute.xlu2 %148 }
 0x26b   :  { %v154_v34 = vmul.f32 %v212_v32, %v149_v33 }
 0x26d   :  { %158 = vrot.lane.b32.xlu0 %v154_v34, %s298_s1 }
 0x272   :  { %v151_v36 = vpop.permute.xlu2 %150 }
 0x273   :  { %v155_v37 = vmul.f32 %v214_v35, %v151_v36 }
 0x275   :  { %160 = vrot.lane.b32.xlu1 %v155_v37, %s298_s1 }
 0x2df   :  { %v159_v38 = vpop.permute.xlu0 %158 }
 0x2e0   :  { %v164_v39 = vadd.f32 %v159_v38, %v140_v27 }
 0x2e2   :  { %166 = vst.msk [vmem:[#allocation7] sm:$0xff] %vm50_vm0, %v164_v39 }
 0x2e7   :  { %v161_v40 = vpop.permute.xlu1 %160 }
 0x2e8   :  { %v165_v41 = vadd.f32 %v161_v40, %v141_v30 }
 0x2ea   :  { %167 = vst.msk [vmem:[#allocation7 + $0x8] sm:$0xff] %vm50_vm0, %v165_v41 }
 0x2eb   :  { %180 = dma.vmem_to_hbm [thread:$0]  %s173_s22, 256, %s175_s25, [#allocation4], %s294_s17, %s294_s17, %s295_s18  }
 0x2ec   :  { %291 = dma.done.wait [#allocation4], 256  }
 0x2ed   :  { %292 = vsyncadd [#allocation4], 4294967040 }
 0x2ee   :  { %185 = vsyncpa [#allocation3], 1 }
 0x2ef   :  { %186 = vsyncpa [#allocation6], 1 }
 0x2f0   :  { %187 = vsyncpa [#allocation4], 1 }

</bundles_post_ra>
